<compile_context>
chip_gen: v7x
topology: tpu7x:2x2x1
jax: 0.10.0
libtpu: 0.0.40
codegen_flags: <defaults>
</compile_context>

<pallas_src>
import jax
import jax.numpy as jnp
from jax.experimental import pallas as pl
from jax.experimental.pallas import tpu as pltpu


def _round_up(x, m):
    return ((x + m - 1) // m) * m


def _cdiv(a, b):
    return -(-a // b)


def _gll_punish_kernel(outputs_ref, targets_ref, partial_ref, acc_ref):
    """Grid = (batch, spatial_tile).

    outputs_ref: (1, 2, TR, 128)  channel 0 = mean, channel 1 = log_var2
    targets_ref: (1, TR, 128)
    partial_ref: (1, 8, 128)      per-batch partial sum (scalar splat)
    acc_ref:     (TR, 128) f32 VMEM accumulator, resident across spatial tiles
    """
    t = pl.program_id(1)

    @pl.when(t == 0)
    def _():
        acc_ref[...] = jnp.zeros_like(acc_ref)

    m = outputs_ref[0, 0].astype(jnp.float32)    # (TR, 128)
    lv = outputs_ref[0, 1].astype(jnp.float32)   # (TR, 128)
    tgt = targets_ref[0].astype(jnp.float32)     # (TR, 128)

    d = m - tgt
    # (m - t)^2 / (2 * exp(lv)) == 0.5 * d^2 * exp(-lv)   (no divide needed)
    term = 0.5 * d * d * jnp.exp(-lv)
    term = term + 0.5 * lv                                # 0.5 * log_var2
    term = term + 2.0 * jnp.maximum(m * m - m, 0.0)       # 2 * relu(m^2 - m)

    acc_ref[...] += term

    @pl.when(t == pl.num_programs(1) - 1)
    def _():
        s = jnp.sum(acc_ref[...])                         # one reduce per batch row
        partial_ref[...] = jnp.broadcast_to(s, partial_ref.shape)


def gaussian_log_likelihood_punishment(outputs, targets, *, max_tile_elems=128 * 1024):
    """outputs: [B, 2, H, W], targets: [B, H, W] -> scalar f32 loss."""
    B, C, H, W = outputs.shape
    assert C == 2, "outputs must have 2 channels (mean, log_var2)"
    assert targets.shape == (B, H, W)
    HW = H * W
    n_elems = B * HW

    # Lane-dense tiling: tile size is a multiple of 1024 (= 8 x 128) capped at
    # max_tile_elems; pad the flattened spatial axis so tiles divide evenly.
    hw_1024 = _round_up(HW, 1024)
    num_tiles = _cdiv(hw_1024, max_tile_elems)
    tn = _round_up(_cdiv(hw_1024, num_tiles), 1024)
    hw_pad = tn * num_tiles
    tr = tn // 128
    rows = hw_pad // 128

    out_flat = outputs.reshape(B, C, HW)
    tgt_flat = targets.reshape(B, HW)
    if hw_pad != HW:
        pad = hw_pad - HW
        # Zero padding contributes 0 to all three loss terms.
        out_flat = jnp.pad(out_flat, ((0, 0), (0, 0), (0, pad)))
        tgt_flat = jnp.pad(tgt_flat, ((0, 0), (0, pad)))
    out_4d = out_flat.reshape(B, C, rows, 128)
    tgt_3d = tgt_flat.reshape(B, rows, 128)

    partials = pl.pallas_call(
        _gll_punish_kernel,
        out_shape=jax.ShapeDtypeStruct((B, 8, 128), jnp.float32),
        grid_spec=pltpu.PrefetchScalarGridSpec(
            num_scalar_prefetch=0,
            grid=(B, num_tiles),
            in_specs=[
                pl.BlockSpec((1, C, tr, 128), lambda b, t: (b, 0, t, 0)),
                pl.BlockSpec((1, tr, 128), lambda b, t: (b, t, 0)),
            ],
            out_specs=pl.BlockSpec((1, 8, 128), lambda b, t: (b, 0, 0)),
            scratch_shapes=[pltpu.VMEM((tr, 128), jnp.float32)],
        ),
        compiler_params=pltpu.CompilerParams(
            # batch axis independent (megacore-shardable); spatial tile axis is
            # the reduction into the resident accumulator.
            dimension_semantics=("parallel", "arbitrary"),
        ),
    )(out_4d, tgt_3d)

    per_batch = partials[:, 0, 0]                 # splatted scalar per batch row
    return jnp.sum(per_batch) / jnp.float32(n_elems)


def _reference(outputs, targets):
    mean = outputs[:, 0, :, :]
    log_var2 = outputs[:, 1, :, :]
    loss_1 = jnp.mean((mean - targets) ** 2 / (2.0 * jnp.exp(log_var2)))
    loss_2 = 0.5 * jnp.mean(log_var2)
    loss_3 = jnp.mean(jnp.maximum(jnp.zeros_like(mean), mean ** 2 - mean))
    return loss_1 + loss_2 + 2.0 * loss_3


if __name__ == "__main__":
    key = jax.random.PRNGKey(0)
    k1, k2 = jax.random.split(key)

    B, H, W = 2, 16, 16
    outputs = jax.random.normal(k1, (B, 2, H, W), dtype=jnp.float32)
    targets = jax.random.normal(k2, (B, H, W), dtype=jnp.float32)

    loss = gaussian_log_likelihood_punishment(outputs, targets)
    jax.block_until_ready(loss)

    ref = _reference(outputs, targets)
    assert jnp.allclose(loss, ref, rtol=1e-5, atol=1e-6), (loss, ref)

    print("KERNEL_OK")
</pallas_src>

<mosaic_0001>
module attributes {stable_mosaic.version = 11 : i64} {
  func.func @_gll_punish_kernel(%arg0: i32, %arg1: i32, %arg2: memref<1x2x8x128xf32, #tpu.memory_space<vmem>>, %arg3: memref<1x8x128xf32, #tpu.memory_space<vmem>>, %arg4: memref<1x8x128xf32, #tpu.memory_space<vmem>>, %arg5: memref<8x128xf32, #tpu.memory_space<vmem>>) attributes {dimension_semantics = [#tpu.dimension_semantics<parallel>, #tpu.dimension_semantics<arbitrary>], iteration_bounds = array<i64: 2, 1>, scalar_prefetch = 0 : i64, scratch_operands = 1 : i64, tpu.core_type = #tpu.core_type<tc>, window_params = [{transform_indices = @transform_0, window_bounds = array<i64: 1, 2, 8, 128>}, {transform_indices = @transform_1, window_bounds = array<i64: 1, 8, 128>}, {transform_indices = @transform_2, window_bounds = array<i64: 1, 8, 128>}]} {
    %c0_i32 = arith.constant 0 : i32
    %0 = arith.cmpi eq, %arg1, %c0_i32 : i32
    %1 = arith.extui %0 : i1 to i32
    %c0_i32_0 = arith.constant 0 : i32
    %2 = arith.cmpi ne, %1, %c0_i32_0 : i32
    scf.if %2 {
      %cst_20 = arith.constant 0.000000e+00 : f32
      %33 = vector.broadcast %cst_20 : f32 to vector<8x128xf32>
      %c0_21 = arith.constant 0 : index
      %c0_22 = arith.constant 0 : index
      %34 = vector.load %arg5[%c0_21, %c0_22] : memref<8x128xf32, #tpu.memory_space<vmem>>, vector<8x128xf32>
      tpu.vector_store %arg5[%c0_21, %c0_22], %33 {strides = array<i32>} : memref<8x128xf32, #tpu.memory_space<vmem>>, vector<8x128xf32>,
    } else {
    }
    %c0 = arith.constant 0 : index
    %c0_1 = arith.constant 0 : index
    %c0_2 = arith.constant 0 : index
    %c0_3 = arith.constant 0 : index
    %3 = vector.load %arg2[%c0, %c0_1, %c0_2, %c0_3] : memref<1x2x8x128xf32, #tpu.memory_space<vmem>>, vector<1x1x8x128xf32>
    %4 = vector.shape_cast %3 : vector<1x1x8x128xf32> to vector<8x128xf32>
    %c0_4 = arith.constant 0 : index
    %c1 = arith.constant 1 : index
    %c0_5 = arith.constant 0 : index
    %c0_6 = arith.constant 0 : index
    %5 = vector.load %arg2[%c0_4, %c1, %c0_5, %c0_6] : memref<1x2x8x128xf32, #tpu.memory_space<vmem>>, vector<1x1x8x128xf32>
    %6 = vector.shape_cast %5 : vector<1x1x8x128xf32> to vector<8x128xf32>
    %c0_7 = arith.constant 0 : index
    %c0_8 = arith.constant 0 : index
    %c0_9 = arith.constant 0 : index
    %7 = vector.load %arg3[%c0_7, %c0_8, %c0_9] : memref<1x8x128xf32, #tpu.memory_space<vmem>>, vector<1x8x128xf32>
    %8 = vector.shape_cast %7 : vector<1x8x128xf32> to vector<8x128xf32>
    %9 = arith.subf %4, %8 : vector<8x128xf32>
    %cst = arith.constant 5.000000e-01 : f32
    %10 = vector.broadcast %cst : f32 to vector<8x128xf32>
    %11 = arith.mulf %10, %9 : vector<8x128xf32>
    %12 = arith.mulf %11, %9 : vector<8x128xf32>
    %cst_10 = arith.constant 0.000000e+00 : f32
    %13 = vector.broadcast %cst_10 : f32 to vector<8x128xf32>
    %14 = arith.subf %13, %6 : vector<8x128xf32>
    %15 = math.exp %14 : vector<8x128xf32>
    %16 = arith.mulf %12, %15 : vector<8x128xf32>
    %cst_11 = arith.constant 5.000000e-01 : f32
    %17 = vector.broadcast %cst_11 : f32 to vector<8x128xf32>
    %18 = arith.mulf %17, %6 : vector<8x128xf32>
    %19 = arith.addf %16, %18 : vector<8x128xf32>
    %20 = arith.mulf %4, %4 : vector<8x128xf32>
    %21 = arith.subf %20, %4 : vector<8x128xf32>
    %cst_12 = arith.constant 0.000000e+00 : f32
    %22 = vector.broadcast %cst_12 : f32 to vector<8x128xf32>
    %23 = arith.maximumf %21, %22 : vector<8x128xf32>
    %cst_13 = arith.constant 2.000000e+00 : f32
    %24 = vector.broadcast %cst_13 : f32 to vector<8x128xf32>
    %25 = arith.mulf %24, %23 : vector<8x128xf32>
    %26 = arith.addf %19, %25 : vector<8x128xf32>
    %c0_14 = arith.constant 0 : index
    %c0_15 = arith.constant 0 : index
    %27 = vector.load %arg5[%c0_14, %c0_15] : memref<8x128xf32, #tpu.memory_space<vmem>>, vector<8x128xf32>
    %28 = arith.addf %27, %26 : vector<8x128xf32>
    %c0_16 = arith.constant 0 : index
    %c0_17 = arith.constant 0 : index
    %29 = vector.load %arg5[%c0_16, %c0_17] : memref<8x128xf32, #tpu.memory_space<vmem>>, vector<8x128xf32>
    tpu.vector_store %arg5[%c0_16, %c0_17], %28 {strides = array<i32>} : memref<8x128xf32, #tpu.memory_space<vmem>>, vector<8x128xf32>,
    %c0_i32_18 = arith.constant 0 : i32
    %30 = arith.cmpi eq, %arg1, %c0_i32_18 : i32
    %31 = arith.extui %30 : i1 to i32
    %c0_i32_19 = arith.constant 0 : i32
    %32 = arith.cmpi ne, %31, %c0_i32_19 : i32
    scf.if %32 {
      %c0_20 = arith.constant 0 : index
      %c0_21 = arith.constant 0 : index
      %33 = vector.load %arg5[%c0_20, %c0_21] : memref<8x128xf32, #tpu.memory_space<vmem>>, vector<8x128xf32>
      %34 = vector.shape_cast %33 : vector<8x128xf32> to vector<1x8x128xf32>
      %cst_22 = arith.constant dense<0.000000e+00> : vector<1xf32>
      %35 = vector.multi_reduction <add>, %34, %cst_22 [1, 2] : vector<1x8x128xf32> to vector<1xf32>
      %36 = vector.shape_cast %35 : vector<1xf32> to vector<1x1x1xf32>
      %37 = vector.extract %36[0, 0, 0] : f32 from vector<1x1x1xf32>
      %38 = vector.broadcast %37 : f32 to vector<1x8x128xf32>
      %c0_23 = arith.constant 0 : index
      %c0_24 = arith.constant 0 : index
      %c0_25 = arith.constant 0 : index
      %39 = vector.load %arg4[%c0_23, %c0_24, %c0_25] : memref<1x8x128xf32, #tpu.memory_space<vmem>>, vector<1x8x128xf32>
      tpu.vector_store %arg4[%c0_23, %c0_24, %c0_25], %38 {strides = array<i32>} : memref<1x8x128xf32, #tpu.memory_space<vmem>>, vector<1x8x128xf32>,
    } else {
    }
    return
  }
  func.func @transform_0(%arg0: i32, %arg1: i32) -> (i32, i32, i32, i32) {
    %c0_i32 = arith.constant 0 : i32
    %c0_i32_0 = arith.constant 0 : i32
    %c0_i32_1 = arith.constant 0 : i32
    return %arg0, %c0_i32, %arg1, %c0_i32_0 : i32, i32, i32, i32
  }
  func.func @transform_1(%arg0: i32, %arg1: i32) -> (i32, i32, i32) {
    %c0_i32 = arith.constant 0 : i32
    %c0_i32_0 = arith.constant 0 : i32
    return %arg0, %arg1, %c0_i32 : i32, i32, i32
  }
  func.func @transform_2(%arg0: i32, %arg1: i32) -> (i32, i32, i32) {
    %c0_i32 = arith.constant 0 : i32
    %c0_i32_0 = arith.constant 0 : i32
    %c0_i32_1 = arith.constant 0 : i32
    return %arg0, %c0_i32, %c0_i32_0 : i32, i32, i32
  }
}

</mosaic_0001>

<bundles_post_ra>
// kernel: tpu_custom_call.1
= control target key start
LH: loop header
LB: loop body
LE: loop exit
PB: predicated region body
PF: predicated region fallthrough
CT: control target
= control target key end

     0   :  { %7 = vsyncpa [#allocation4], 0  ;;  %s855_s0 = inlined_call_operand.hbm [shape: f32[2,2,8,128], index: 0, kind: input, shape index: {}]   ;;  %s856_s1 = inlined_call_operand.hbm [shape: f32[2,8,128], index: 1, kind: input, shape index: {}]   ;;  %s857_s2 = inlined_call_operand.hbm [shape: f32[2,8,128], index: 2, kind: output, shape index: {}]  }
   0x1   :  { %9 = vsyncpa [#allocation4 + $0x1], 0 }
   0x2   :  { %10 = vsyncpa [#allocation7], 0 }
   0x3   :  { %12 = vsyncpa [#allocation7 + $0x1], 0 }
   0x4   :  { %13 = vsyncpa [#allocation5], 0 }
   0x5   :  { %15 = vsyncpa [#allocation5 + $0x1], 0  ;;  %s636_s9 = smov 0   ;;  %s638_s10 = smov 0  }
   0x6   :  { %s640_s11 = smov 0   ;;  %s642_s12 = smov 0  }
   0x7   :  { %s644_s13 = smov 0   ;;  %s646_s14 = smov 0  }
   0x8 LB: > { %s376_s15 = sadd.s32 4294967295, %s614_s14   ;;  %s377_s16 = sadd.s32 4294967294, %s614_s14   ;;  %s614_s14 = sphi %s646_s14, %s21_s14   ;;  %s610_s13 = sphi %s644_s13, %s876_s13   ;;  %s606_s12 = sphi %s642_s12, %s875_s12   ;;  %s602_s11 = sphi %s640_s11, %s874_s11   ;;  %s598_s10 = sphi %s638_s10, %s873_s10   ;;  %s594_s9 = sphi %s636_s9, %s872_s9  }
   0x9   : > { %s33_s17 = sadd.s32 1, %s610_s13  ;;  %s42_s18 = sadd.s32 1, %s602_s11 }
   0xa   : > { %p35_p0 = scmp.ge.s32.totalorder %s33_s17, 2  ;;  %p49_p1 = scmp.ne.s32.totalorder %s602_s11, %s598_s10 }
   0xb   : > { %p50_p2 = scmp.eq.s32.totalorder %s614_s14, 0  ;;  %p55_p3 = scmp.ne.s32.totalorder %s598_s10, %s594_s9 }
   0xc   : > { %s878_s17 = smov (%p35_p0, %s33_s17), 0  ;;  %p56_p5 = scmp.eq.s32.totalorder %s376_s15, 0 }
   0xd   : > { %p677_p4 = por %p50_p2, %p49_p1  ;;  %s37_s20 = ssub.s32 %s610_s13, %s878_s17 }
   0xe   : > { %p107_p6 = scmp.eq.s32.totalorder %s376_s15, 1  ;;  %p40_p7 = scmp.eq.s32.totalorder %s37_s20, 0 }
   0xf   : > { %p683_p8 = por %p56_p5, %p55_p3  ;;  %p113_p10 = scmp.eq.s32.totalorder %s377_s16, 1 }
  0x10   : > { %p687_p9 = por %p107_p6, %p49_p1  ;;  %p414_p13 = scmp.lt.s32.totalorder %s614_s14, 2 }
  0x11   : > { %s861_s21 = scalar_select %p683_p8, 1, 0 }
  0x12   : > { %s862_s22 = scalar_select %p687_p9, 1, 0 }
  0x13   : > { %s692_s23 = scalar_select %p40_p7, %s602_s11, %s42_s18  }
  0x14   : > { %p694_p11 = por %p113_p10, %p55_p3  ;;  %s701_s25 = sand.u32 1, %s602_s11  }
  0x15   : > { %s380_s26 = sshll.u32 %s701_s25, 4  ;;  %s394_s27 = sshll.u32 %s610_s13, 8 }
  0x16   : > { %s863_s24 = scalar_select %p694_p11, 1, 0 }
  0x17   : > { %s708_s30 = scalar_lea.hbm %s855_s0, %s394_s27  ;;  %s137_s3 = scalar_lea.vmem [#allocation3], %s380_s26 }
  0x18   : > { %s145_s4 = sshll.u32 %s137_s3, 4  ;;  %p714_p0 = pnand %p414_p13, %p677_p4  ;;  %s710_s4 = int_to_ptr.vmem [resolvable:$true] %s145_s4 }
  0x19   : > { %s134_s6 = scalar_lea.sflag [#allocation4], %s701_s25  ;;  %s468_s7 = scalar_lea.hbm %s708_s30, 256 }
  0x1a   : > { %p469_p2 = scmp.ne.s32.totalorder %s708_s30, %s468_s7  ;;  %p470_p3 = pneg %p714_p0 }
  0x1b   : > { %s473_s16 = scalar_lea.hbm %s855_s0, 512  ;;  %p474_p4 = scmp.lt.u32.totalorder %s708_s30, %s855_s0 }
  0x1c   : > { %p471_p5 = pnand %p470_p3, %p469_p2  ;;  %p475_p7 = scmp.lt.u32.totalorder %s473_s16, %s468_s7 }
  0x1d   : > { %p477_p13 = scmp.lt.u32.totalorder %s468_s7, %s708_s30 }
  0x1e   : > { %p472_p6 = pneg %p471_p5  ;;  %p476_p10 = por %p475_p7, %p474_p4 }
  0x20   : > { %p478_p12 = por %p477_p13, %p476_p10 }
  0x22   : > { %p479_p1 = pnand %p478_p12, %p472_p6 }
  0x24   : > { %482 = shalt.err (!%p479_p1)
}
  0x25   : > { %s483_s20 = scalar_lea.vmem %s710_s4, 256  ;;  %s616_s26 = smov [#allocation3]  }
  0x26   : > { %p484_p2 = scmp.ne.s32.totalorder %s710_s4, %s483_s20  ;;  %s488_s27 = sshll.u32 %s616_s26, 4  ;;  %s489_s27 = int_to_ptr.vmem [resolvable:$false] %s488_s27 }
  0x27   : > { %s490_s28 = scalar_lea.vmem %s489_s27, 512  ;;  %p491_p9 = scmp.lt.s32.totalorder %s710_s4, %s489_s27 }
  0x28   : > { %p486_p5 = pnand %p484_p2, %p470_p3  ;;  %p492_p4 = scmp.lt.s32.totalorder %s490_s28, %s483_s20 }
  0x2a   : > { %p487_p11 = pneg %p486_p5  ;;  %p493_p7 = por %p492_p4, %p491_p9 }
  0x2c   : > { %p494_p10 = pnand %p493_p7, %p487_p11 }
  0x2e   : > { %497 = shalt.err (!%p494_p10)
}
  0x2f   : > { %s617_s29 = smov 128   ;;  %s618_s3 = smov 8  }
  0x30   : > { %406 = dma.hbm_to_vmem [thread:$0]  (!%p714_p0), %s708_s30, 256, %s710_s4, %s134_s6, %s617_s29, %s617_s29, %s618_s3  }
  0x31   : > { %p172_p12 = scmp.lt.s32.totalorder %s614_s14, 3  ;;  %s383_s7 = sshll.u32 %s701_s25, 3 }
  0x32   : > { %s384_s8 = sshll.u32 %s610_s13, 7  ;;  %p865_p9 = scmp.ge.s32.totalorder %s614_s14, 1 }
  0x33   : > { %s759_s19 = scalar_lea.hbm %s856_s1, %s384_s8  ;;  %s159_s20 = scalar_lea.vmem [#allocation6], %s383_s7 }
  0x34   : > { %p752_p11 = pnand %p865_p9, %p172_p12  ;;  %s167_s26 = sshll.u32 %s159_s20, 4  ;;  %s168_s26 = int_to_ptr.vmem [resolvable:$true] %s167_s26 }
  0x35   : > { %s156_s30 = scalar_lea.sflag [#allocation7], %s701_s25  ;;  %s498_s4 = scalar_lea.hbm %s759_s19, 128 }
  0x36   : > { %s866_s15 = scalar_select %p752_p11, 1, 0 }
  0x37   : > { %p499_p1 = scmp.ne.s32.totalorder %s759_s19, %s498_s4  ;;  %s503_s28 = scalar_lea.hbm %s856_s1, 256 }
  0x38   : > { %p504_p2 = scmp.lt.u32.totalorder %s759_s19, %s856_s1  ;;  %p505_p5 = scmp.lt.u32.totalorder %s503_s28, %s498_s4 }
  0x39   : > { %p501_p6 = pnand %p499_p1, %p470_p3  ;;  %p507_p7 = scmp.lt.u32.totalorder %s498_s4, %s759_s19 }
  0x3a   : > { %p506_p4 = por %p505_p5, %p504_p2 }
  0x3b   : > { %p502_p13 = pneg %p501_p6 }
  0x3c   : > { %p508_p10 = por %p507_p7, %p506_p4 }
  0x3e   : > { %p509_p12 = pnand %p508_p10, %p502_p13 }
  0x40   : > { %512 = shalt.err (!%p509_p12)
}
  0x41   : > { %s513_s25 = scalar_lea.vmem %s168_s26, 128  ;;  %s619_s7 = smov [#allocation6]  }
  0x42   : > { %p514_p9 = scmp.ne.s32.totalorder %s168_s26, %s513_s25  ;;  %s518_s8 = sshll.u32 %s619_s7, 4  ;;  %s519_s8 = int_to_ptr.vmem [resolvable:$false] %s518_s8 }
  0x43   : > { %s520_s16 = scalar_lea.vmem %s519_s8, 256  ;;  %p521_p8 = scmp.lt.s32.totalorder %s168_s26, %s519_s8 }
  0x44   : > { %p516_p1 = pnand %p514_p9, %p470_p3  ;;  %p522_p11 = scmp.lt.s32.totalorder %s520_s16, %s513_s25 }
  0x46   : > { %p517_p6 = pneg %p516_p1  ;;  %p523_p2 = por %p522_p11, %p521_p8 }
  0x48   : > { %p524_p5 = pnand %p523_p2, %p517_p6 }
  0x4a   : > { %527 = shalt.err (!%p524_p5)
}
  0x4b   : > { %409 = dma.hbm_to_vmem [thread:$0]  (!%p714_p0), %s759_s19, 128, %s168_s26, %s156_s30  }
  0x4c   : > { %p867_p13 = scmp.ne.s32.totalorder %s866_s15, 0 }
  0x4d   : > { %s784_s18 = sand.u32 (!%p867_p13), 1, %s598_s10   ;;  %p868_p3 = scmp.ne.s32.totalorder (!%p867_p13), %s861_s21, 0 }
  0x4e   : > { %176 = sbr.rel (%p867_p13) target bundleno = 330 (0x14a), region = 28  ;;  %s386_s20 = sshll.u32 (!%p867_p13), %s784_s18, 4 }
  0x4f   : > { %s179_s4 = scalar_lea.sflag (!%p867_p13), [#allocation4], %s784_s18  ;;  %s182_s6 = scalar_lea.vmem (!%p867_p13), [#allocation3], %s386_s20 }
  0x55   : > { %581 = dma.done.wait (%p868_p3), %s179_s4, 256  }
  0x56   : > { %583 = vsyncadd (%p868_p3), %s179_s4, 4294967040  ;;  %s387_s5 = sshll.u32 %s784_s18, 3  ;;  %s188_s15 = scalar_lea.sflag [#allocation7], %s784_s18 }
  0x57   : > { %s191_s19 = scalar_lea.vmem [#allocation6], %s387_s5 }
  0x58   : > { %585 = dma.done.wait (%p868_p3), %s188_s15, 128  }
  0x59   : > { %587 = vsyncadd (%p868_p3), %s188_s15, 4294967168  ;;  %v389_v0 = vld [vmem:[%s182_s6 + $0x8] sm:$0xff]  ;;  %v222_v1 = vld [vmem:[%s182_s6] sm:$0xff]  ;;  %s216_s21 = scalar_lea.vmem [#allocation8], %s387_s5  ;;  %s391_s30 = sshll.u32 %s606_s12, 7 }
  0x5a   : > { %v225_v2 = vld [vmem:[%s191_s19] sm:$0xff]  ;;  %v229_v3 = vsub.f32 0.0, %v389_v0  ;;  %v235_v6 = vmul.f32 %v222_v1, %v222_v1  ;;  %v233_v11 = vmul.f32 0.5, %v389_v0  ;;  %s272_s26 = sshll.u32 %s216_s21, 4  ;;  %s808_s3 = scalar_lea.hbm %s857_s2, %s391_s30  ;;  %s803_s26 = int_to_ptr.vmem [resolvable:$true] %s272_s26 }
  0x5b   : > { %v226_v5 = vsub.f32 %v222_v1, %v225_v2  ;;  %s259_s25 = scalar_lea.sflag [#allocation5], %s784_s18  ;;  %s528_s7 = scalar_lea.vmem %s803_s26, 128 }
  0x5c   : > { %v230_v4 = vmul.f32 1.442695, %v229_v3  ;;  %v236_v8 = vsub.f32 %v235_v6, %v222_v1  ;;  %p529_p8 = scmp.ne.s32.totalorder %s803_s26, %s528_s7  ;;  %p869_p0 = scmp.ne.s32.totalorder %s862_s22, 0 }
  0x5d   : > { %v227_v7 = vmul.f32 0.5, %v226_v5  ;;  %s620_s12 = smov [#allocation8]  }
  0x5e   : > { %466 = vpow2.f32 %v230_v4  ;;  %v237_v10 = vmax.f32 %v236_v8, 0.0  ;;  %p530_p11 = pnand %p529_p8, %p869_p0  ;;  %s532_s8 = sshll.u32 %s620_s12, 4  ;;  %s533_s8 = int_to_ptr.vmem [resolvable:$false] %s532_s8 }
  0x5f   : > { %v228_v9 = vmul.f32 %v227_v7, %v226_v5  ;;  %s534_s16 = scalar_lea.vmem %s533_s8, 256  ;;  %p535_p7 = scmp.lt.s32.totalorder %s803_s26, %s533_s8 }
  0x60   : > { %v238_v14 = vmul.f32 2.0, %v237_v10  ;;  %p531_p4 = pneg %p530_p11  ;;  %p536_p10 = scmp.lt.s32.totalorder %s534_s16, %s528_s7 }
  0x62   : > { %p537_p12 = por %p536_p10, %p535_p7 }
  0x64   : > { %p538_p9 = pnand %p537_p12, %p531_p4 }
  0x68   : > { %v467_v12 = vpop.eup %466 }
  0x69   : > { %v232_v13 = vmul.f32 %v467_v12, %v228_v9 }
  0x6b   : > { %v234_v15 = vadd.f32 %v233_v11, %v232_v13 }
  0x6d   : > { %v239_v16 = vadd.f32 %v238_v14, %v234_v15 }
  0x6f   : > { %247 = vadd.xlane.f32.xlu0 %v239_v16 }
  0xfc   : > { %v248_v17 = vpop.xlane.xlu0 %247 }
  0xfd   : > { %v249_v18 = vrot.slane %v248_v17, 4 }
  0xff   : > { %v250_v19 = vadd.f32 %v249_v18, %v248_v17 }
 0x101   : > { %v251_v20 = vrot.slane %v250_v19, 2 }
 0x103   : > { %v252_v21 = vadd.f32 %v251_v20, %v250_v19 }
 0x105   : > { %v253_v22 = vrot.slane %v252_v21, 1 }
 0x107   : > { %v254_v23 = vadd.f32 %v253_v22, %v252_v21 }
 0x109   : > { %395 = vpush %v254_v23 }
 0x13a   : > { %s396_s27 = spop %395 }
 0x13b   : > { %v256_v24 = vstv %s396_s27 }
 0x13c   : > { %257 = vst [vmem:[%s216_s21] sm:$0xff] %v256_v24 }
 0x13d   : > { %541 = shalt.err (!%p538_p9)
}
 0x13e   : > { %s542_s18 = scalar_lea.hbm %s808_s3, 128  ;;  %s546_s6 = scalar_lea.hbm %s857_s2, 256 }
 0x13f   : > { %p543_p1 = scmp.ne.s32.totalorder %s808_s3, %s542_s18  ;;  %p547_p5 = scmp.lt.u32.totalorder %s808_s3, %s857_s2 }
 0x140   : > { %p548_p13 = scmp.lt.u32.totalorder %s546_s6, %s542_s18  ;;  %p550_p8 = scmp.lt.u32.totalorder %s542_s18, %s808_s3 }
 0x141   : > { %p544_p6 = pnand %p543_p1, %p869_p0 }
 0x142   : > { %p549_p3 = por %p548_p13, %p547_p5 }
 0x143   : > { %p545_p2 = pneg %p544_p6 }
 0x144   : > { %p551_p11 = por %p550_p8, %p549_p3 }
 0x146   : > { %p552_p4 = pnand %p551_p11, %p545_p2 }
 0x148   : > { %555 = shalt.err (!%p552_p4)
}
 0x149   : > { %401 = dma.vmem_to_hbm [thread:$0]  (%p869_p0), %s803_s26, 128, %s808_s3, %s259_s25  }
 0x14a PF: > { %s284_s19 = sand.u32 1, %s594_s9   ;;  %p870_p7 = scmp.ne.s32.totalorder %s863_s24, 0 }
 0x14b   : > { %p871_p10 = scmp.ge.s32.totalorder %s614_s14, 2  ;;  %s285_s21 = scalar_lea.sflag [#allocation5], %s284_s19 }
 0x14d   : > { %p411_p12 = pnand %p871_p10, %p870_p7 }
 0x14f   : > { %589 = dma.done.wait (!%p411_p12), %s285_s21, 128  }
 0x150   : > { %591 = vsyncadd (!%p411_p12), %s285_s21, 4294967168  ;;  %s21_s14 = sadd.s32 1, %s614_s14   ;;  %s872_s9 = smov %s598_s10 }
 0x151   : > { %p18_p9 = scmp.ge.s32.totalorder %s21_s14, 4   ;;  %s873_s10 = smov %s602_s11 }
 0x152   : > { %s874_s11 = smov %s692_s23  ;;  %s875_s12 = smov %s610_s13 }
 0x153   : > { %s876_s13 = smov %s878_s17  ;;  %20 = sbr.rel (!%p18_p9) target bundleno = 8 (0x8), region = 95 }
 0x15a   :  { %290 = vsyncpa [#allocation4], 1 }
 0x15b   :  { %292 = vsyncpa [#allocation4 + $0x1], 1 }
 0x15c   :  { %293 = vsyncpa [#allocation7], 1 }
 0x15d   :  { %295 = vsyncpa [#allocation7 + $0x1], 1 }
 0x15e   :  { %296 = vsyncpa [#allocation5], 1 }
 0x15f   :  { %298 = vsyncpa [#allocation5 + $0x1], 1 }

</bundles_post_ra>
